<compile_context>
chip_gen: v6e
topology: v6e:2x2x1
jax: 0.10.0
libtpu: 0.0.40
codegen_flags: <defaults>
</compile_context>

<pallas_src>
import math

import jax
import jax.numpy as jnp
from jax.experimental import pallas as pl
from jax.experimental.pallas import tpu as pltpu


def _round_up(a, m):
    return ((a + m - 1) // m) * m


def _vmem_capacity_bytes():
    try:
        return int(pltpu.get_tpu_info().vmem_capacity_bytes)
    except Exception:
        return 64 * 1024 * 1024  # conservative default (v7x has 64 MiB per TC)


def _choose_tiling(batch, cin, cout, n_lanes, vmem_cap):
    """Pick a lane tile T (multiple of 128) and the padded lane count K_pad."""
    k128 = _round_up(max(n_lanes, 1), 128)
    # VMEM bytes per lane per pipeline buffer: xr/xi (f32), wr/wi (bf16),
    # or/oi (f32); second-to-last block dims padded to the native sublane tile.
    bytes_per_lane = (2 * batch * _round_up(cin, 8) * 4
                      + 2 * cin * _round_up(cout, 16) * 2
                      + 2 * batch * _round_up(cout, 8) * 4)
    t_vmem = int(0.4 * vmem_cap) // (2 * bytes_per_lane)  # 2x: double buffering
    # vreg pressure per 128 lanes: acc_r/acc_i + per-Cin-step x and f32-upcast w.
    vregs_per_128 = (2 * batch * pl.cdiv(cout, 8)
                     + 2 * batch
                     + 2 * pl.cdiv(cout, 8))
    t_vreg = (40 * 128) // vregs_per_128                   # keep <= ~40/64 vregs live
    t = max(128, min(t_vmem, t_vreg, 4096))
    t = (t // 128) * 128
    t = min(t, k128)
    # Prefer >= 2 grid steps so the "parallel" axis can occupy both v7x TCs.
    if k128 >= 256:
        t = min(t, _round_up(pl.cdiv(k128, 2), 128))
    k_pad = _round_up(n_lanes, t)
    return t, k_pad


def _contract_diagonal_kernel(xr_ref, xi_ref, wr_ref, wi_ref, or_ref, oi_ref):
    """Complex diagonal contraction: out[b,o,k] = sum_i x[b,i,k] * w[i,o,k].

    xr/xi : [B, Cin,  T] float32   (real / imag spectral activations)
    wr/wi : [Cin, Cout, T] bfloat16 (complex weight planes, upcast in-kernel)
    or/oi : [B, Cout, T] float32
    """
    cin = wr_ref.shape[0]
    acc_r = jnp.zeros(or_ref.shape, jnp.float32)
    acc_i = jnp.zeros(oi_ref.shape, jnp.float32)
    # Cin is small here, so a static loop keeps only per-step slices live.
    # For large Cin switch to lax.fori_loop(..., unroll=True).
    for i in range(cin):
        xr_i = xr_ref[:, i:i + 1, :]                       # [B, 1, T]
        xi_i = xi_ref[:, i:i + 1, :]
        wr_i = wr_ref[i:i + 1, :, :].astype(jnp.float32)   # [1, Cout, T]
        wi_i = wi_ref[i:i + 1, :, :].astype(jnp.float32)
        acc_r = acc_r + (xr_i * wr_i - xi_i * wi_i)
        acc_i = acc_i + (xr_i * wi_i + xi_i * wr_i)
    or_ref[...] = acc_r
    oi_ref[...] = acc_i


def _spectral_contract(xr, xi, wr, wi, lane_tile, vmem_cap):
    """Pallas-driven complex 'bik,iok->bok' over the lane-dense flattened modes."""
    B, Cin, K_pad = xr.shape
    Cout = wr.shape[1]
    T = lane_tile
    grid = (K_pad // T,)

    x_spec = pl.BlockSpec((B, Cin, T), lambda k: (0, 0, k))
    w_spec = pl.BlockSpec((Cin, Cout, T), lambda k: (0, 0, k))
    o_spec = pl.BlockSpec((B, Cout, T), lambda k: (0, 0, k))

    out_shape = (jax.ShapeDtypeStruct((B, Cout, K_pad), jnp.float32),
                 jax.ShapeDtypeStruct((B, Cout, K_pad), jnp.float32))

    return pl.pallas_call(
        _contract_diagonal_kernel,
        out_shape=out_shape,
        grid_spec=pltpu.PrefetchScalarGridSpec(
            num_scalar_prefetch=0,
            grid=grid,
            in_specs=[x_spec, x_spec, w_spec, w_spec],
            out_specs=[o_spec, o_spec],
        ),
        compiler_params=pltpu.CompilerParams(
            dimension_semantics=("parallel",),
            vmem_limit_bytes=min(int(0.75 * vmem_cap), 112 * 1024 * 1024),
        ),
    )(xr, xi, wr, wi)


def pack_weight(weight, batch_size):
    """One-time parameter packing (done at init, not per forward).

    weight: [Cin, Cout, modes_lat, modes_lon] complex64
    Returns ((wr, wi) bf16 planes flattened to a lane-dense, tile-padded last
    dim, metadata dict with the tiling choice).
    """
    cin, cout, mlat, mlon = weight.shape
    n_lanes = mlat * mlon
    vmem_cap = _vmem_capacity_bytes()
    lane_tile, lanes_padded = _choose_tiling(batch_size, cin, cout, n_lanes, vmem_cap)

    wr = jnp.real(weight).astype(jnp.bfloat16).reshape(cin, cout, n_lanes)
    wi = jnp.imag(weight).astype(jnp.bfloat16).reshape(cin, cout, n_lanes)
    pad = lanes_padded - n_lanes
    wr = jnp.pad(wr, ((0, 0), (0, 0), (0, pad)))
    wi = jnp.pad(wi, ((0, 0), (0, 0), (0, pad)))

    meta = dict(in_channels=cin, out_channels=cout, modes_lat=mlat,
                modes_lon=mlon, lane_tile=lane_tile, lanes_padded=lanes_padded,
                vmem_cap=vmem_cap)
    return (wr, wi), meta


def factorized_spectral_conv_forward(x, packed_weight, meta):
    """Forward pass of FactorizedSpectralConv.

    x : [B, Cin, nlat, nlon] real (NCHW)
    Returns (y, residual) with y: [B, Cout, nlat, nlon]; residual == x
    (scale_residual is False since forward/inverse transforms share the grid).
    """
    dtype = x.dtype
    residual = x

    B = x.shape[0]
    Cin = meta["in_channels"]
    Cout = meta["out_channels"]
    mlat, mlon = meta["modes_lat"], meta["modes_lon"]
    K = mlat * mlon
    K_pad = meta["lanes_padded"]

    xf = x.astype(jnp.float32)
    # forward transform (stand-in for RealSHT)
    xhat = jnp.fft.rfft2(xf, axes=(-2, -1))              # [B, Cin, L, M] complex64
    L, M = xhat.shape[-2], xhat.shape[-1]

    # retained-mode block, split into lane-dense real/imag planes.
    # TODO(synk): fold this split and the recombine below into the kernel via an
    # interleaved complex bitcast layout to save ~2 HBM passes on activations.
    xm = xhat[..., :mlat, :mlon]
    pad = K_pad - K
    xr = jnp.pad(jnp.real(xm).reshape(B, Cin, K), ((0, 0), (0, 0), (0, pad)))
    xi = jnp.pad(jnp.imag(xm).reshape(B, Cin, K), ((0, 0), (0, 0), (0, pad)))

    wr, wi = packed_weight
    out_r, out_i = _spectral_contract(xr, xi, wr, wi, meta["lane_tile"],
                                      meta["vmem_cap"])

    # reassemble the retained-mode block, zero-fill the truncated modes
    xp_block = (out_r[..., :K] + 1j * out_i[..., :K]).reshape(B, Cout, mlat, mlon)
    xp = jnp.zeros((B, Cout, L, M), jnp.complex64)
    xp = xp.at[..., :mlat, :mlon].set(xp_block.astype(jnp.complex64))

    # inverse transform back to the grid (stand-in for InverseRealSHT)
    y = jnp.fft.irfft2(xp, s=x.shape[-2:], axes=(-2, -1))
    return y.astype(dtype), residual


def _reference_forward(x, weight, modes_lat, modes_lon):
    """Pure-JAX reference for validation (same spectral stand-in)."""
    xhat = jnp.fft.rfft2(x.astype(jnp.float32), axes=(-2, -1))
    B = x.shape[0]
    Cout = weight.shape[1]
    L, M = xhat.shape[-2], xhat.shape[-1]
    xm = xhat[..., :modes_lat, :modes_lon]
    xp_block = jnp.einsum("bixy,ioxy->boxy", xm, weight)
    xp = jnp.zeros((B, Cout, L, M), jnp.complex64)
    xp = xp.at[..., :modes_lat, :modes_lon].set(xp_block)
    y = jnp.fft.irfft2(xp, s=x.shape[-2:], axes=(-2, -1))
    return y.astype(x.dtype), x


if __name__ == "__main__":
    # Small shapes consistent with the module's forward semantics.
    B, Cin, Cout = 2, 4, 4
    nlat, nlon = 16, 16
    modes_lat = nlat            # lmax of the (stand-in) inverse transform
    modes_lon = nlon // 2 + 1   # mmax of the (stand-in) inverse transform

    key = jax.random.PRNGKey(0)
    kx, kwr, kwi = jax.random.split(key, 3)

    x = jax.random.normal(kx, (B, Cin, nlat, nlon), dtype=jnp.float32)

    # weight per module __init__ (diagonal, non-separable, ComplexDense):
    # [in_channels, out_channels, modes_lat, modes_lon], complex, std = sqrt(0.1/in)
    scale = math.sqrt(0.1 / float(Cin))
    w_re = scale * jax.random.normal(kwr, (Cin, Cout, modes_lat, modes_lon), jnp.float32)
    w_im = scale * jax.random.normal(kwi, (Cin, Cout, modes_lat, modes_lon), jnp.float32)
    # Parameter storage is bf16 (halves the dominant HBM stream); the reference
    # uses the identical bf16-rounded values so the check isolates the kernel.
    w_re_b = w_re.astype(jnp.bfloat16)
    w_im_b = w_im.astype(jnp.bfloat16)
    weight_c = (w_re_b.astype(jnp.float32)
                + 1j * w_im_b.astype(jnp.float32)).astype(jnp.complex64)

    packed, meta = pack_weight(weight_c, batch_size=B)

    fwd = jax.jit(lambda xx: factorized_spectral_conv_forward(xx, packed, meta))
    y, res = fwd(x)
    y = jax.block_until_ready(y)
    res = jax.block_until_ready(res)

    y_ref, res_ref = _reference_forward(x, weight_c, modes_lat, modes_lon)
    assert y.shape == (B, Cout, nlat, nlon)
    assert res.shape == x.shape
    assert jnp.allclose(y, y_ref, atol=1e-3, rtol=1e-3), "kernel mismatch vs reference"
    assert jnp.allclose(res, res_ref), "residual mismatch"

    print("KERNEL_OK")
</pallas_src>

<mosaic_0001>
module attributes {stable_mosaic.version = 11 : i64} {
  func.func @_contract_diagonal_kernel(%arg0: i32, %arg1: memref<2x4x128xf32, #tpu.memory_space<vmem>>, %arg2: memref<2x4x128xf32, #tpu.memory_space<vmem>>, %arg3: memref<4x4x128xbf16, #tpu.memory_space<vmem>>, %arg4: memref<4x4x128xbf16, #tpu.memory_space<vmem>>, %arg5: memref<2x4x128xf32, #tpu.memory_space<vmem>>, %arg6: memref<2x4x128xf32, #tpu.memory_space<vmem>>) attributes {dimension_semantics = [#tpu.dimension_semantics<parallel>], iteration_bounds = array<i64: 2>, scalar_prefetch = 0 : i64, scratch_operands = 0 : i64, tpu.core_type = #tpu.core_type<tc>, window_params = [{transform_indices = @transform_0, window_bounds = array<i64: 2, 4, 128>}, {transform_indices = @transform_1, window_bounds = array<i64: 2, 4, 128>}, {transform_indices = @transform_2, window_bounds = array<i64: 4, 4, 128>}, {transform_indices = @transform_3, window_bounds = array<i64: 4, 4, 128>}, {transform_indices = @transform_4, window_bounds = array<i64: 2, 4, 128>}, {transform_indices = @transform_5, window_bounds = array<i64: 2, 4, 128>}]} {
    %cst = arith.constant 0.000000e+00 : f32
    %0 = vector.broadcast %cst : f32 to vector<2x4x128xf32>
    %cst_0 = arith.constant 0.000000e+00 : f32
    %1 = vector.broadcast %cst_0 : f32 to vector<2x4x128xf32>
    %c0 = arith.constant 0 : index
    %c0_1 = arith.constant 0 : index
    %c0_2 = arith.constant 0 : index
    %2 = vector.load %arg1[%c0, %c0_1, %c0_2] : memref<2x4x128xf32, #tpu.memory_space<vmem>>, vector<2x1x128xf32>
    %c0_3 = arith.constant 0 : index
    %c0_4 = arith.constant 0 : index
    %c0_5 = arith.constant 0 : index
    %3 = vector.load %arg2[%c0_3, %c0_4, %c0_5] : memref<2x4x128xf32, #tpu.memory_space<vmem>>, vector<2x1x128xf32>
    %c0_6 = arith.constant 0 : index
    %c0_7 = arith.constant 0 : index
    %c0_8 = arith.constant 0 : index
    %4 = vector.load %arg3[%c0_6, %c0_7, %c0_8] : memref<4x4x128xbf16, #tpu.memory_space<vmem>>, vector<1x4x128xbf16>
    %5 = arith.extf %4 : vector<1x4x128xbf16> to vector<1x4x128xf32>
    %c0_9 = arith.constant 0 : index
    %c0_10 = arith.constant 0 : index
    %c0_11 = arith.constant 0 : index
    %6 = vector.load %arg4[%c0_9, %c0_10, %c0_11] : memref<4x4x128xbf16, #tpu.memory_space<vmem>>, vector<1x4x128xbf16>
    %7 = arith.extf %6 : vector<1x4x128xbf16> to vector<1x4x128xf32>
    %8 = vector.broadcast %2 : vector<2x1x128xf32> to vector<2x4x128xf32>
    %9 = vector.broadcast %5 : vector<1x4x128xf32> to vector<2x4x128xf32>
    %10 = arith.mulf %8, %9 : vector<2x4x128xf32>
    %11 = vector.broadcast %3 : vector<2x1x128xf32> to vector<2x4x128xf32>
    %12 = vector.broadcast %7 : vector<1x4x128xf32> to vector<2x4x128xf32>
    %13 = arith.mulf %11, %12 : vector<2x4x128xf32>
    %14 = arith.subf %10, %13 : vector<2x4x128xf32>
    %15 = arith.addf %0, %14 : vector<2x4x128xf32>
    %16 = vector.broadcast %2 : vector<2x1x128xf32> to vector<2x4x128xf32>
    %17 = vector.broadcast %7 : vector<1x4x128xf32> to vector<2x4x128xf32>
    %18 = arith.mulf %16, %17 : vector<2x4x128xf32>
    %19 = vector.broadcast %3 : vector<2x1x128xf32> to vector<2x4x128xf32>
    %20 = vector.broadcast %5 : vector<1x4x128xf32> to vector<2x4x128xf32>
    %21 = arith.mulf %19, %20 : vector<2x4x128xf32>
    %22 = arith.addf %18, %21 : vector<2x4x128xf32>
    %23 = arith.addf %1, %22 : vector<2x4x128xf32>
    %c0_12 = arith.constant 0 : index
    %c1 = arith.constant 1 : index
    %c0_13 = arith.constant 0 : index
    %24 = vector.load %arg1[%c0_12, %c1, %c0_13] : memref<2x4x128xf32, #tpu.memory_space<vmem>>, vector<2x1x128xf32>
    %c0_14 = arith.constant 0 : index
    %c1_15 = arith.constant 1 : index
    %c0_16 = arith.constant 0 : index
    %25 = vector.load %arg2[%c0_14, %c1_15, %c0_16] : memref<2x4x128xf32, #tpu.memory_space<vmem>>, vector<2x1x128xf32>
    %c1_17 = arith.constant 1 : index
    %c0_18 = arith.constant 0 : index
    %c0_19 = arith.constant 0 : index
    %26 = vector.load %arg3[%c1_17, %c0_18, %c0_19] : memref<4x4x128xbf16, #tpu.memory_space<vmem>>, vector<1x4x128xbf16>
    %27 = arith.extf %26 : vector<1x4x128xbf16> to vector<1x4x128xf32>
    %c1_20 = arith.constant 1 : index
    %c0_21 = arith.constant 0 : index
    %c0_22 = arith.constant 0 : index
    %28 = vector.load %arg4[%c1_20, %c0_21, %c0_22] : memref<4x4x128xbf16, #tpu.memory_space<vmem>>, vector<1x4x128xbf16>
    %29 = arith.extf %28 : vector<1x4x128xbf16> to vector<1x4x128xf32>
    %30 = vector.broadcast %24 : vector<2x1x128xf32> to vector<2x4x128xf32>
    %31 = vector.broadcast %27 : vector<1x4x128xf32> to vector<2x4x128xf32>
    %32 = arith.mulf %30, %31 : vector<2x4x128xf32>
    %33 = vector.broadcast %25 : vector<2x1x128xf32> to vector<2x4x128xf32>
    %34 = vector.broadcast %29 : vector<1x4x128xf32> to vector<2x4x128xf32>
    %35 = arith.mulf %33, %34 : vector<2x4x128xf32>
    %36 = arith.subf %32, %35 : vector<2x4x128xf32>
    %37 = arith.addf %15, %36 : vector<2x4x128xf32>
    %38 = vector.broadcast %24 : vector<2x1x128xf32> to vector<2x4x128xf32>
    %39 = vector.broadcast %29 : vector<1x4x128xf32> to vector<2x4x128xf32>
    %40 = arith.mulf %38, %39 : vector<2x4x128xf32>
    %41 = vector.broadcast %25 : vector<2x1x128xf32> to vector<2x4x128xf32>
    %42 = vector.broadcast %27 : vector<1x4x128xf32> to vector<2x4x128xf32>
    %43 = arith.mulf %41, %42 : vector<2x4x128xf32>
    %44 = arith.addf %40, %43 : vector<2x4x128xf32>
    %45 = arith.addf %23, %44 : vector<2x4x128xf32>
    %c0_23 = arith.constant 0 : index
    %c2 = arith.constant 2 : index
    %c0_24 = arith.constant 0 : index
    %46 = vector.load %arg1[%c0_23, %c2, %c0_24] : memref<2x4x128xf32, #tpu.memory_space<vmem>>, vector<2x1x128xf32>
    %c0_25 = arith.constant 0 : index
    %c2_26 = arith.constant 2 : index
    %c0_27 = arith.constant 0 : index
    %47 = vector.load %arg2[%c0_25, %c2_26, %c0_27] : memref<2x4x128xf32, #tpu.memory_space<vmem>>, vector<2x1x128xf32>
    %c2_28 = arith.constant 2 : index
    %c0_29 = arith.constant 0 : index
    %c0_30 = arith.constant 0 : index
    %48 = vector.load %arg3[%c2_28, %c0_29, %c0_30] : memref<4x4x128xbf16, #tpu.memory_space<vmem>>, vector<1x4x128xbf16>
    %49 = arith.extf %48 : vector<1x4x128xbf16> to vector<1x4x128xf32>
    %c2_31 = arith.constant 2 : index
    %c0_32 = arith.constant 0 : index
    %c0_33 = arith.constant 0 : index
    %50 = vector.load %arg4[%c2_31, %c0_32, %c0_33] : memref<4x4x128xbf16, #tpu.memory_space<vmem>>, vector<1x4x128xbf16>
    %51 = arith.extf %50 : vector<1x4x128xbf16> to vector<1x4x128xf32>
    %52 = vector.broadcast %46 : vector<2x1x128xf32> to vector<2x4x128xf32>
    %53 = vector.broadcast %49 : vector<1x4x128xf32> to vector<2x4x128xf32>
    %54 = arith.mulf %52, %53 : vector<2x4x128xf32>
    %55 = vector.broadcast %47 : vector<2x1x128xf32> to vector<2x4x128xf32>
    %56 = vector.broadcast %51 : vector<1x4x128xf32> to vector<2x4x128xf32>
    %57 = arith.mulf %55, %56 : vector<2x4x128xf32>
    %58 = arith.subf %54, %57 : vector<2x4x128xf32>
    %59 = arith.addf %37, %58 : vector<2x4x128xf32>
    %60 = vector.broadcast %46 : vector<2x1x128xf32> to vector<2x4x128xf32>
    %61 = vector.broadcast %51 : vector<1x4x128xf32> to vector<2x4x128xf32>
    %62 = arith.mulf %60, %61 : vector<2x4x128xf32>
    %63 = vector.broadcast %47 : vector<2x1x128xf32> to vector<2x4x128xf32>
    %64 = vector.broadcast %49 : vector<1x4x128xf32> to vector<2x4x128xf32>
    %65 = arith.mulf %63, %64 : vector<2x4x128xf32>
    %66 = arith.addf %62, %65 : vector<2x4x128xf32>
    %67 = arith.addf %45, %66 : vector<2x4x128xf32>
    %c0_34 = arith.constant 0 : index
    %c3 = arith.constant 3 : index
    %c0_35 = arith.constant 0 : index
    %68 = vector.load %arg1[%c0_34, %c3, %c0_35] : memref<2x4x128xf32, #tpu.memory_space<vmem>>, vector<2x1x128xf32>
    %c0_36 = arith.constant 0 : index
    %c3_37 = arith.constant 3 : index
    %c0_38 = arith.constant 0 : index
    %69 = vector.load %arg2[%c0_36, %c3_37, %c0_38] : memref<2x4x128xf32, #tpu.memory_space<vmem>>, vector<2x1x128xf32>
    %c3_39 = arith.constant 3 : index
    %c0_40 = arith.constant 0 : index
    %c0_41 = arith.constant 0 : index
    %70 = vector.load %arg3[%c3_39, %c0_40, %c0_41] : memref<4x4x128xbf16, #tpu.memory_space<vmem>>, vector<1x4x128xbf16>
    %71 = arith.extf %70 : vector<1x4x128xbf16> to vector<1x4x128xf32>
    %c3_42 = arith.constant 3 : index
    %c0_43 = arith.constant 0 : index
    %c0_44 = arith.constant 0 : index
    %72 = vector.load %arg4[%c3_42, %c0_43, %c0_44] : memref<4x4x128xbf16, #tpu.memory_space<vmem>>, vector<1x4x128xbf16>
    %73 = arith.extf %72 : vector<1x4x128xbf16> to vector<1x4x128xf32>
    %74 = vector.broadcast %68 : vector<2x1x128xf32> to vector<2x4x128xf32>
    %75 = vector.broadcast %71 : vector<1x4x128xf32> to vector<2x4x128xf32>
    %76 = arith.mulf %74, %75 : vector<2x4x128xf32>
    %77 = vector.broadcast %69 : vector<2x1x128xf32> to vector<2x4x128xf32>
    %78 = vector.broadcast %73 : vector<1x4x128xf32> to vector<2x4x128xf32>
    %79 = arith.mulf %77, %78 : vector<2x4x128xf32>
    %80 = arith.subf %76, %79 : vector<2x4x128xf32>
    %81 = arith.addf %59, %80 : vector<2x4x128xf32>
    %82 = vector.broadcast %68 : vector<2x1x128xf32> to vector<2x4x128xf32>
    %83 = vector.broadcast %73 : vector<1x4x128xf32> to vector<2x4x128xf32>
    %84 = arith.mulf %82, %83 : vector<2x4x128xf32>
    %85 = vector.broadcast %69 : vector<2x1x128xf32> to vector<2x4x128xf32>
    %86 = vector.broadcast %71 : vector<1x4x128xf32> to vector<2x4x128xf32>
    %87 = arith.mulf %85, %86 : vector<2x4x128xf32>
    %88 = arith.addf %84, %87 : vector<2x4x128xf32>
    %89 = arith.addf %67, %88 : vector<2x4x128xf32>
    %c0_45 = arith.constant 0 : index
    %c0_46 = arith.constant 0 : index
    %c0_47 = arith.constant 0 : index
    %90 = vector.load %arg5[%c0_45, %c0_46, %c0_47] : memref<2x4x128xf32, #tpu.memory_space<vmem>>, vector<2x4x128xf32>
    tpu.vector_store %arg5[%c0_45, %c0_46, %c0_47], %81 {strides = array<i32>} : memref<2x4x128xf32, #tpu.memory_space<vmem>>, vector<2x4x128xf32>,
    %c0_48 = arith.constant 0 : index
    %c0_49 = arith.constant 0 : index
    %c0_50 = arith.constant 0 : index
    %91 = vector.load %arg6[%c0_48, %c0_49, %c0_50] : memref<2x4x128xf32, #tpu.memory_space<vmem>>, vector<2x4x128xf32>
    tpu.vector_store %arg6[%c0_48, %c0_49, %c0_50], %89 {strides = array<i32>} : memref<2x4x128xf32, #tpu.memory_space<vmem>>, vector<2x4x128xf32>,
    return
  }
  func.func @transform_0(%arg0: i32) -> (i32, i32, i32) {
    %c0_i32 = arith.constant 0 : i32
    %c0_i32_0 = arith.constant 0 : i32
    %c0_i32_1 = arith.constant 0 : i32
    return %c0_i32, %c0_i32_0, %arg0 : i32, i32, i32
  }
  func.func @transform_1(%arg0: i32) -> (i32, i32, i32) {
    %c0_i32 = arith.constant 0 : i32
    %c0_i32_0 = arith.constant 0 : i32
    %c0_i32_1 = arith.constant 0 : i32
    return %c0_i32, %c0_i32_0, %arg0 : i32, i32, i32
  }
  func.func @transform_2(%arg0: i32) -> (i32, i32, i32) {
    %c0_i32 = arith.constant 0 : i32
    %c0_i32_0 = arith.constant 0 : i32
    %c0_i32_1 = arith.constant 0 : i32
    return %c0_i32, %c0_i32_0, %arg0 : i32, i32, i32
  }
  func.func @transform_3(%arg0: i32) -> (i32, i32, i32) {
    %c0_i32 = arith.constant 0 : i32
    %c0_i32_0 = arith.constant 0 : i32
    %c0_i32_1 = arith.constant 0 : i32
    return %c0_i32, %c0_i32_0, %arg0 : i32, i32, i32
  }
  func.func @transform_4(%arg0: i32) -> (i32, i32, i32) {
    %c0_i32 = arith.constant 0 : i32
    %c0_i32_0 = arith.constant 0 : i32
    %c0_i32_1 = arith.constant 0 : i32
    return %c0_i32, %c0_i32_0, %arg0 : i32, i32, i32
  }
  func.func @transform_5(%arg0: i32) -> (i32, i32, i32) {
    %c0_i32 = arith.constant 0 : i32
    %c0_i32_0 = arith.constant 0 : i32
    %c0_i32_1 = arith.constant 0 : i32
    return %c0_i32, %c0_i32_0, %arg0 : i32, i32, i32
  }
}

</mosaic_0001>

<bundles_post_ra>
// kernel: _lambda_.1
= control target key start
LH: loop header
LB: loop body
LE: loop exit
PB: predicated region body
PF: predicated region fallthrough
CT: control target
= control target key end

     0   :  { %s1031_s18 = smov 0   ;;  %s1033_s19 = smov 0   ;;  %s1170_s0 = inlined_call_operand.vmem [shape: f32[2,4,256], index: 0, kind: input, shape index: {}]   ;;  %s1171_s1 = inlined_call_operand.vmem [shape: f32[2,4,256], index: 1, kind: input, shape index: {}]   ;;  %s1172_s2 = inlined_call_operand.vmem [shape: bf16[4,4,256], index: 2, kind: input, shape index: {}]   ;;  %s1173_s3 = inlined_call_operand.vmem [shape: bf16[4,4,256], index: 3, kind: input, shape index: {}]   ;;  %s1174_s4 = inlined_call_operand.vmem [shape: f32[2,4,256], index: 4, kind: output, shape index: {0}]   ;;  %s1175_s5 = inlined_call_operand.vmem [shape: f32[2,4,256], index: 5, kind: output, shape index: {1}]  }
   0x1   :  { %s1035_s20 = smov 0  }
   0x2 LB: > { %s1047_s21 = sadd.s32 4294967295, %s999_s20   ;;  %s1050_s22 = sadd.s32 1, %s999_s20   ;;  %s999_s20 = sphi %s1035_s20, %s1180_s20   ;;  %s995_s19 = sphi %s1033_s19, %s1179_s19   ;;  %s991_s18 = sphi %s1031_s18, %s1178_s18  }
   0x3   : > { %s20_s23 = ssub.s32 %s999_s20, %s1050_s22  ;;  %s23_s24 = sadd.s32 1, %s995_s19 }
   0x4   : > { %p21_p0 = scmp.eq.s32.totalorder %s20_s23, 0  ;;  %p30_p1 = scmp.ne.s32.totalorder %s995_s19, %s991_s18 }
   0x5   : > { %p31_p2 = scmp.eq.s32.totalorder %s999_s20, 0  ;;  %p138_p3 = scmp.eq.s32.totalorder %s1047_s21, 1 }
   0x6   : > { %s1060_s25 = scalar_select %p21_p0, %s995_s19, %s23_s24  }
   0x7   : > { %p1062_p4 = por %p31_p2, %p30_p1  ;;  %p1066_p5 = por %p138_p3, %p30_p1 }
   0x8   : > { %p909_p6 = scmp.ge.s32.totalorder %s999_s20, 2 }
   0xa   : > { %186 = sbr.rel (%p909_p6) target bundleno = 37 (0x25), region = 16 }
   0xf   : > { %189 = sbr.rel (!%p1062_p4) target bundleno = 20 (0x14), region = 20  ;;  %s191_s28 = sand.u32 (%p1062_p4), 1, %s995_s19  }
  0x10   : > { %s911_s29 = sshll.u32 (%p1062_p4), %s999_s20, 2  ;;  %s910_s30 = sshll.u32 (%p1062_p4), %s191_s28, 3 }
  0x11   : > { %s195_s8 = scalar_lea.vmem (%p1062_p4), %s1170_s0, %s911_s29  ;;  %s193_s9 = scalar_lea.vmem (%p1062_p4), [#allocation2], %s910_s30 }
  0x12   : > { %v212_v0 = vld [vmem:[%s195_s8] sm:$0xf] (%p1062_p4)  ;;  %v214_v1 = vld [vmem:[%s195_s8 + $0x8] sm:$0xf] (%p1062_p4) }
  0x13   : > { %213 = vst [vmem:[%s193_s9] sm:$0xf] (%p1062_p4), %v212_v0  ;;  %215 = vst [vmem:[%s193_s9 + $0x4] sm:$0xf] (%p1062_p4), %v214_v1 }
  0x14 PF: > { %243 = sbr.rel (!%p1062_p4) target bundleno = 25 (0x19), region = 61  ;;  %s245_s10 = sand.u32 (%p1062_p4), 1, %s995_s19  }
  0x15   : > { %s913_s11 = sshll.u32 (%p1062_p4), %s999_s20, 2  ;;  %s912_s12 = sshll.u32 (%p1062_p4), %s245_s10, 3 }
  0x16   : > { %s249_s15 = scalar_lea.vmem (%p1062_p4), %s1171_s1, %s913_s11  ;;  %s247_s16 = scalar_lea.vmem (%p1062_p4), [#allocation3], %s912_s12 }
  0x17   : > { %v266_v2 = vld [vmem:[%s249_s15] sm:$0xf] (%p1062_p4)  ;;  %v268_v3 = vld [vmem:[%s249_s15 + $0x8] sm:$0xf] (%p1062_p4) }
  0x18   : > { %267 = vst [vmem:[%s247_s16] sm:$0xf] (%p1062_p4), %v266_v2  ;;  %269 = vst [vmem:[%s247_s16 + $0x4] sm:$0xf] (%p1062_p4), %v268_v3 }
  0x19 PF: > { %297 = sbr.rel (!%p1062_p4) target bundleno = 31 (0x1f), region = 102  ;;  %s299_s17 = sand.u32 (%p1062_p4), 1, %s995_s19  }
  0x1a   : > { %s915_s23 = sshll.u32 (%p1062_p4), %s999_s20, 1  ;;  %s914_s24 = sshll.u32 (%p1062_p4), %s299_s17, 3 }
  0x1b   : > { %s303_s30 = scalar_lea.vmem (%p1062_p4), %s1172_s2, %s915_s23  ;;  %s301_s6 = scalar_lea.vmem (%p1062_p4), [#allocation4], %s914_s24 }
  0x1c   : > { %v320_v4 = vld [vmem:[%s303_s30] sm:$0x3] (%p1062_p4)  ;;  %v322_v5 = vld [vmem:[%s303_s30 + $0x4] sm:$0x3] (%p1062_p4)  ;;  %v324_v6 = vld [vmem:[%s303_s30 + $0x8] sm:$0x3] (%p1062_p4) }
  0x1d   : > { %321 = vst [vmem:[%s301_s6] sm:$0x3] (%p1062_p4), %v320_v4  ;;  %323 = vst [vmem:[%s301_s6 + $0x2] sm:$0x3] (%p1062_p4), %v322_v5  ;;  %v326_v7 = vld [vmem:[%s303_s30 + $0xc] sm:$0x3] (%p1062_p4) }
  0x1e   : > { %325 = vst [vmem:[%s301_s6 + $0x4] sm:$0x3] %v324_v6  ;;  %327 = vst [vmem:[%s301_s6 + $0x6] sm:$0x3] %v326_v7 }
  0x1f PF: > { %359 = sbr.rel (!%p1062_p4) target bundleno = 37 (0x25), region = 143  ;;  %s361_s7 = sand.u32 (%p1062_p4), 1, %s995_s19  }
  0x20   : > { %s917_s8 = sshll.u32 (%p1062_p4), %s999_s20, 1  ;;  %s916_s9 = sshll.u32 (%p1062_p4), %s361_s7, 3 }
  0x21   : > { %s365_s12 = scalar_lea.vmem (%p1062_p4), %s1173_s3, %s917_s8  ;;  %s363_s13 = scalar_lea.vmem (%p1062_p4), [#allocation5], %s916_s9 }
  0x22   : > { %v382_v8 = vld [vmem:[%s365_s12] sm:$0x3] (%p1062_p4)  ;;  %v384_v9 = vld [vmem:[%s365_s12 + $0x4] sm:$0x3] (%p1062_p4)  ;;  %v386_v10 = vld [vmem:[%s365_s12 + $0x8] sm:$0x3] (%p1062_p4) }
  0x23   : > { %383 = vst [vmem:[%s363_s13] sm:$0x3] (%p1062_p4), %v382_v8  ;;  %385 = vst [vmem:[%s363_s13 + $0x2] sm:$0x3] (%p1062_p4), %v384_v9  ;;  %v388_v11 = vld [vmem:[%s365_s12 + $0xc] sm:$0x3] (%p1062_p4) }
  0x24   : > { %387 = vst [vmem:[%s363_s13 + $0x4] sm:$0x3] %v386_v10  ;;  %389 = vst [vmem:[%s363_s13 + $0x6] sm:$0x3] %v388_v11 }
  0x25 PF: > { %p918_p7 = scmp.ge.s32.totalorder %s999_s20, 1  ;;  %p420_p8 = scmp.lt.s32.totalorder %s999_s20, 3 }
  0x27   : > { %p421_p9 = pnand %p918_p7, %p420_p8 }
  0x28   : > { %s427_s26 = sand.u32 (!%p421_p9), 1, %s991_s18  }
  0x29   : > { %424 = sbr.rel (%p421_p9) target bundleno = 81 (0x51), region = 184  ;;  %s1102_s14 = sshll.u32 (!%p421_p9), %s427_s26, 3 }
  0x2a   : > { %s1105_s15 = scalar_lea.vmem (!%p421_p9), [#allocation2], %s1102_s14  ;;  %s1109_s16 = scalar_lea.vmem (!%p421_p9), [#allocation3], %s1102_s14 }
  0x2b   : > { %s443_s20 = scalar_lea.vmem (!%p421_p9), [#allocation4], %s1102_s14  ;;  %s450_s18 = scalar_lea.vmem (!%p421_p9), [#allocation5], %s1102_s14 }
  0x2c   : > { %s483_s17 = scalar_lea.vmem (!%p421_p9), [#allocation6], %s1102_s14  ;;  %s489_s23 = scalar_lea.vmem (!%p421_p9), [#allocation7], %s1102_s14 }
  0x2e   : > { %v925_v12 = vld [vmem:[%s1105_s15] ss:$0 sm:$0xff]  ;;  %v927_v13 = vld [vmem:[%s1109_s16] ss:$0 sm:$0xff]  ;;  %v931_v18 = vld [vmem:[%s1105_s15 + $0x1] ss:$0 sm:$0xff] }
  0x2f   : > { %v494_v14 = vld [vmem:[%s443_s20] sm:$0x3]  ;;  %v496_v15 = vld [vmem:[%s450_s18] sm:$0x3]  ;;  %v929_v20 = vld [vmem:[%s443_s20 + $0x2] sm:$0x3] }
  0x30   : > { %v1114_v16 = vunpack.c.l.bf16 %v494_v14  ;;  %v1116_v17 = vunpack.c.l.bf16 %v496_v15  ;;  %v933_v19 = vld [vmem:[%s1109_s16 + $0x1] ss:$0 sm:$0xff]  ;;  %v1120_v21 = vunpack.c.l.bf16 %v929_v20  ;;  %v930_v22 = vld [vmem:[%s450_s18 + $0x2] sm:$0x3]  ;;  %v937_v23 = vld [vmem:[%s1105_s15 + $0x2] ss:$0 sm:$0xff] }
  0x31   : > { %v939_v24 = vld [vmem:[%s1109_s16 + $0x2] ss:$0 sm:$0xff]  ;;  %v539_v27 = vunpack.c.l.bf16 %v930_v22  ;;  %v935_v28 = vld [vmem:[%s443_s20 + $0x4] sm:$0x3]  ;;  %v936_v29 = vld [vmem:[%s450_s18 + $0x4] sm:$0x3] }
  0x32   : > { %v506_v25 = vmul.f32 %v925_v12, %v1114_v16  ;;  %v516_v26 = vmul.f32 %v927_v13, %v1116_v17  ;;  %v943_v30 = vld [vmem:[%s1105_s15 + $0x3] ss:$0 sm:$0xff]  ;;  %v522_v31 = vmul.f32 %v925_v12, %v1116_v17  ;;  %v548_v32 = vmul.f32 %v931_v18, %v1120_v21  ;;  %v945_v35 = vld [vmem:[%s1109_s16 + $0x3] ss:$0 sm:$0xff]  ;;  %v941_v36 = vld [vmem:[%s443_s20 + $0x6] sm:$0x3] }
  0x33   : > { %v578_v33 = vunpack.c.l.bf16 %v935_v28  ;;  %v581_v34 = vunpack.c.l.bf16 %v936_v29  ;;  %v942_v37 = vld [vmem:[%s450_s18 + $0x6] sm:$0x3]  ;;  %v524_v38 = vmul.f32 %v927_v13, %v1114_v16  ;;  %v558_v40 = vmul.f32 %v933_v19, %v539_v27  ;;  %v926_v43 = vld [vmem:[%s1105_s15 + $0x4] ss:$0 sm:$0xff]  ;;  %v928_v44 = vld [vmem:[%s1109_s16 + $0x4] ss:$0 sm:$0xff] }
  0x34   : > { %v518_v39 = vsub.f32 %v506_v25, %v516_v26  ;;  %v620_v41 = vunpack.c.l.bf16 %v941_v36  ;;  %v623_v42 = vunpack.c.l.bf16 %v942_v37  ;;  %v932_v45 = vld [vmem:[%s1105_s15 + $0x5] ss:$0 sm:$0xff]  ;;  %v507_v48 = vmul.f32 %v926_v43, %v1114_v16  ;;  %v934_v50 = vld [vmem:[%s1109_s16 + $0x5] ss:$0 sm:$0xff]  ;;  %v938_v51 = vld [vmem:[%s1105_s15 + $0x6] ss:$0 sm:$0xff] }
  0x35   : > { %v590_v46 = vmul.f32 %v937_v23, %v578_v33  ;;  %v600_v47 = vmul.f32 %v939_v24, %v581_v34  ;;  %v517_v49 = vmul.f32 %v928_v44, %v1116_v17  ;;  %v940_v52 = vld [vmem:[%s1109_s16 + $0x6] ss:$0 sm:$0xff]  ;;  %v560_v53 = vsub.f32 %v548_v32, %v558_v40  ;;  %v944_v57 = vld [vmem:[%s1105_s15 + $0x7] ss:$0 sm:$0xff]  ;;  %v946_v58 = vld [vmem:[%s1109_s16 + $0x7] ss:$0 sm:$0xff] }
  0x36   : > { %v632_v54 = vmul.f32 %v943_v30, %v620_v41  ;;  %v642_v55 = vmul.f32 %v945_v35, %v623_v42  ;;  %v549_v56 = vmul.f32 %v932_v45, %v1120_v21  ;;  %v559_v61 = vmul.f32 %v934_v50, %v539_v27  ;;  %s949_s24 = sshll.u32 (%p1066_p5), %s1047_s21, 2 }
  0x37   : > { %v602_v59 = vsub.f32 %v590_v46, %v600_v47  ;;  %v519_v60 = vsub.f32 %v507_v48, %v517_v49  ;;  %v591_v62 = vmul.f32 %v938_v51, %v578_v33  ;;  %v562_v63 = vadd.f32 %v560_v53, %v518_v39  ;;  %s672_s30 = scalar_lea.vmem (%p1066_p5), %s1174_s4, %s949_s24 }
  0x38   : > { %v644_v0 = vsub.f32 %v632_v54, %v642_v55  ;;  %v601_v1 = vmul.f32 %v940_v52, %v581_v34  ;;  %v633_v2 = vmul.f32 %v944_v57, %v620_v41  ;;  %v561_v3 = vsub.f32 %v549_v56, %v559_v61 }
  0x39   : > { %v643_v4 = vmul.f32 %v946_v58, %v623_v42  ;;  %v526_v5 = vadd.f32 %v524_v38, %v522_v31  ;;  %v564_v6 = vmul.f32 %v931_v18, %v539_v27  ;;  %v604_v7 = vadd.f32 %v602_v59, %v562_v63 }
  0x3a   : > { %v603_v8 = vsub.f32 %v591_v62, %v601_v1  ;;  %v566_v9 = vmul.f32 %v933_v19, %v1120_v21  ;;  %v606_v10 = vmul.f32 %v937_v23, %v581_v34  ;;  %v563_v11 = vadd.f32 %v561_v3, %v519_v60 }
  0x3b   : > { %v645_v12 = vsub.f32 %v633_v2, %v643_v4  ;;  %v608_v13 = vmul.f32 %v939_v24, %v578_v33  ;;  %v648_v14 = vmul.f32 %v943_v30, %v623_v42  ;;  %v646_v15 = vadd.f32 %v644_v0, %v604_v7 }
  0x3c   : > { %v568_v20 = vadd.f32 %v566_v9, %v564_v6  ;;  %v650_v22 = vmul.f32 %v945_v35, %v620_v41  ;;  %v523_v25 = vmul.f32 %v926_v43, %v1116_v17  ;;  %v605_v26 = vadd.f32 %v603_v8, %v563_v11 }
  0x3d   : > { %v610_v28 = vadd.f32 %v608_v13, %v606_v10  ;;  %v525_v29 = vmul.f32 %v928_v44, %v1114_v16  ;;  %v565_v18 = vmul.f32 %v932_v45, %v539_v27  ;;  %656 = vst [vmem:[%s483_s17] sm:$0xf] %v646_v15  ;;  %v567_v23 = vmul.f32 %v934_v50, %v1120_v21 }
  0x3e   : > { %v570_v31 = vadd.f32 %v568_v20, %v526_v5  ;;  %v652_v19 = vadd.f32 %v650_v22, %v648_v14  ;;  %v607_v32 = vmul.f32 %v938_v51, %v581_v34  ;;  %v647_v24 = vadd.f32 %v645_v12, %v605_v26 }
  0x3f   : > { %v527_v30 = vadd.f32 %v525_v29, %v523_v25  ;;  %v609_v36 = vmul.f32 %v940_v52, %v578_v33  ;;  %v649_v37 = vmul.f32 %v944_v57, %v623_v42  ;;  %v569_v38 = vadd.f32 %v567_v23, %v565_v18 }
  0x40   : > { %v612_v35 = vadd.f32 %v610_v28, %v570_v31  ;;  %v651_v17 = vmul.f32 %v946_v58, %v620_v41  ;;  %657 = vst [vmem:[%s483_s17 + $0x4] sm:$0xf] %v647_v24 }
  0x41   : > { %v611_v39 = vadd.f32 %v609_v36, %v607_v32  ;;  %v571_v16 = vadd.f32 %v569_v38, %v527_v30 }
  0x42   : > { %v654_v40 = vadd.f32 %v652_v19, %v612_v35  ;;  %v653_v27 = vadd.f32 %v651_v17, %v649_v37 }
  0x43   : > { %v613_v43 = vadd.f32 %v611_v39, %v571_v16  ;;  %670 = sbr.rel (!%p1066_p5) target bundleno = 73 (0x49), region = 204 }
  0x44   : > { %658 = vst [vmem:[%s489_s23] sm:$0xf] %v654_v40  ;;  %v689_v21 = vld [vmem:[%s483_s17] sm:$0xf] (%p1066_p5) }
  0x45   : > { %v655_v44 = vadd.f32 %v653_v27, %v613_v43  ;;  %690 = vst [vmem:[%s672_s30] sm:$0xf] (%p1066_p5), %v689_v21 }
  0x47   : > { %659 = vst [vmem:[%s489_s23 + $0x4] sm:$0xf] %v655_v44  ;;  %v691_v33 = vld [vmem:[%s483_s17 + $0x4] sm:$0xf] (%p1066_p5) }
  0x48   : > { %692 = vst [vmem:[%s672_s30 + $0x8] sm:$0xf] %v691_v33 }
  0x49 PF: > { %720 = sbr.rel (!%p1066_p5) target bundleno = 81 (0x51), region = 245  ;;  %s950_s6 = sshll.u32 (%p1066_p5), %s1047_s21, 2 }
  0x4a   : > { %s722_s9 = scalar_lea.vmem (%p1066_p5), %s1175_s5, %s950_s6 }
  0x4c   : > { %v739_v34 = vld [vmem:[%s489_s23] sm:$0xf] (%p1066_p5) }
  0x4d   : > { %740 = vst [vmem:[%s722_s9] sm:$0xf] (%p1066_p5), %v739_v34 }
  0x4f   : > { %v741_v41 = vld [vmem:[%s489_s23 + $0x4] sm:$0xf] }
  0x50   : > { %742 = vst [vmem:[%s722_s9 + $0x8] sm:$0xf] %v741_v41 }
  0x51 PF: > { %p13_p10 = scmp.ge.s32.totalorder %s1050_s22, 4   ;;  %s1178_s18 = smov %s995_s19 }
  0x52   : > { %s1179_s19 = smov %s1060_s25  ;;  %s1180_s20 = smov %s1050_s22 }
  0x53   :  { %15 = sbr.rel (!%p13_p10) target bundleno = 2 (0x2), region = 359 }

// kernel: reverse.1
= control target key start
LH: loop header
LB: loop body
LE: loop exit
PB: predicated region body
PF: predicated region fallthrough
CT: control target
= control target key end

     0   :  { %v72_v3 = vlaneseq  ;;  %v65_v9 = vld [vmem:[#allocation0 + $0x7] ss:$-1 sm:$0xff]  ;;  %v79_v12 = vld [vmem:[#allocation0 + $0x17] ss:$-1 sm:$0xff]  ;;  %s331_s0 = inlined_call_operand.vmem [shape: f32[2,4,16,7], index: 0, kind: input, shape index: {}]   ;;  %s332_s1 = inlined_call_operand.vmem [shape: f32[2,4,16,7], index: 1, kind: output, shape index: {}]  }
   0x1   :  { %v45_v0 = vld [vmem:[%s331_s0] sm:$0xff]  ;;  %v47_v1 = vld [vmem:[%s331_s0 + $0x8] sm:$0xff]  ;;  %v49_v2 = vld [vmem:[%s331_s0 + $0x10] sm:$0xff]  ;;  %v66_v10 = vrot.slane %v65_v9, 1  ;;  %v80_v14 = vrot.slane %v79_v12, 1 }
   0x2   :  { %46 = vst [vmem:[#allocation0 + $0x8] sm:$0xff] %v45_v0  ;;  %48 = vst [vmem:[#allocation0 + $0x18] sm:$0xff] %v47_v1  ;;  %v51_v4 = vld [vmem:[%s331_s0 + $0x18] sm:$0xff]  ;;  %v53_v5 = vld [vmem:[%s331_s0 + $0x20] sm:$0xff]  ;;  %v73_v11 = vshrl.u32 %v72_v3, 7 }
   0x3   :  { %50 = vst [vmem:[#allocation0 + $0x28] sm:$0xff] %v49_v2  ;;  %v55_v6 = vld [vmem:[%s331_s0 + $0x28] sm:$0xff]  ;;  %52 = vst [vmem:[#allocation0 + $0x38] sm:$0xff] %v51_v4  ;;  %v57_v7 = vld [vmem:[%s331_s0 + $0x30] sm:$0xff] }
   0x4   :  { %54 = vst [vmem:[#allocation0 + $0x48] sm:$0xff] %v53_v5  ;;  %56 = vst [vmem:[#allocation0 + $0x58] sm:$0xff] %v55_v6  ;;  %v59_v8 = vld [vmem:[%s331_s0 + $0x38] sm:$0xff]  ;;  %v93_v13 = vld [vmem:[#allocation0 + $0x27] ss:$-1 sm:$0xff]  ;;  %vm74_vm0 = vcmp.lt.s32.totalorder %v73_v11, 7 }
   0x5   :  { %58 = vst [vmem:[#allocation0 + $0x68] sm:$0xff] %v57_v7  ;;  %60 = vst [vmem:[#allocation0 + $0x78] sm:$0xff] %v59_v8  ;;  %v94_v15 = vrot.slane %v93_v13, 1  ;;  %v107_v16 = vld [vmem:[#allocation0 + $0x37] ss:$-1 sm:$0xff] }
   0x6   :  { %67 = vst [vmem:[#allocation1] sm:$0xff] %v66_v10  ;;  %v108_v17 = vrot.slane %v107_v16, 1  ;;  %v121_v18 = vld [vmem:[#allocation0 + $0x47] ss:$-1 sm:$0xff]  ;;  %v135_v19 = vld [vmem:[#allocation0 + $0x57] ss:$-1 sm:$0xff] }
   0x7   :  { %81 = vst [vmem:[#allocation1 + $0x8] sm:$0xff] %v80_v14  ;;  %95 = vst [vmem:[#allocation1 + $0x10] sm:$0xff] %v94_v15  ;;  %v122_v20 = vrot.slane %v121_v18, 1  ;;  %v136_v21 = vrot.slane %v135_v19, 1  ;;  %v149_v22 = vld [vmem:[#allocation0 + $0x67] ss:$-1 sm:$0xff] }
   0x8   :  { %v163_v23 = vld [vmem:[#allocation0 + $0x77] ss:$-1 sm:$0xff]  ;;  %109 = vst [vmem:[#allocation1 + $0x18] sm:$0xff] %v108_v17  ;;  %v150_v24 = vrot.slane %v149_v22, 1 }
   0x9   :  { %v164_v25 = vrot.slane %v163_v23, 1  ;;  %v70_v26 = vld [vmem:[#allocation0 + $0xf] ss:$-1 sm:$0xff]  ;;  %v84_v27 = vld [vmem:[#allocation0 + $0x1f] ss:$-1 sm:$0xff]  ;;  %123 = vst [vmem:[#allocation1 + $0x20] sm:$0xff] %v122_v20 }
   0xa   :  { %v98_v28 = vld [vmem:[#allocation0 + $0x2f] ss:$-1 sm:$0xff]  ;;  %137 = vst [vmem:[#allocation1 + $0x28] sm:$0xff] %v136_v21  ;;  %v71_v29 = vrot.slane %v70_v26, 1  ;;  %v85_v30 = vrot.slane %v84_v27, 1  ;;  %151 = vst [vmem:[#allocation1 + $0x30] sm:$0xff] %v150_v24 }
   0xb   :  { %v99_v31 = vrot.slane %v98_v28, 1  ;;  %v112_v32 = vld [vmem:[#allocation0 + $0x3f] ss:$-1 sm:$0xff]  ;;  %165 = vst [vmem:[#allocation1 + $0x38] sm:$0xff] %v164_v25  ;;  %v126_v34 = vld [vmem:[#allocation0 + $0x4f] ss:$-1 sm:$0xff] }
   0xc   :  { %v113_v33 = vrot.slane %v112_v32, 1  ;;  %v140_v35 = vld [vmem:[#allocation0 + $0x5f] ss:$-1 sm:$0xff]  ;;  %75 = vst.msk [vmem:[#allocation1] sm:$0xff] %vm74_vm0, %v71_v29  ;;  %89 = vst.msk [vmem:[#allocation1 + $0x8] sm:$0xff] %vm74_vm0, %v85_v30  ;;  %v127_v36 = vrot.slane %v126_v34, 1 }
   0xd   :  { %103 = vst.msk [vmem:[#allocation1 + $0x10] sm:$0xff] %vm74_vm0, %v99_v31  ;;  %v141_v37 = vrot.slane %v140_v35, 1  ;;  %v154_v38 = vld [vmem:[#allocation0 + $0x6f] ss:$-1 sm:$0xff]  ;;  %v168_v39 = vld [vmem:[#allocation0 + $0x7f] ss:$-1 sm:$0xff] }
   0xe   :  { %117 = vst.msk [vmem:[#allocation1 + $0x18] sm:$0xff] %vm74_vm0, %v113_v33  ;;  %v155_v40 = vrot.slane %v154_v38, 1  ;;  %v169_v41 = vrot.slane %v168_v39, 1  ;;  %131 = vst.msk [vmem:[#allocation1 + $0x20] sm:$0xff] %vm74_vm0, %v127_v36 }
   0xf   :  { %145 = vst.msk [vmem:[#allocation1 + $0x28] sm:$0xff] %vm74_vm0, %v141_v37 }
  0x10   :  { %159 = vst.msk [vmem:[#allocation1 + $0x30] sm:$0xff] %vm74_vm0, %v155_v40  ;;  %173 = vst.msk [vmem:[#allocation1 + $0x38] sm:$0xff] %vm74_vm0, %v169_v41 }
  0x13   :  { %v216_v42 = vld [vmem:[#allocation1] sm:$0xff]  ;;  %v218_v43 = vld [vmem:[#allocation1 + $0x8] sm:$0xff] }
  0x14   :  { %v220_v44 = vld [vmem:[#allocation1 + $0x10] sm:$0xff]  ;;  %217 = vst [vmem:[%s332_s1] sm:$0xff] %v216_v42  ;;  %219 = vst [vmem:[%s332_s1 + $0x8] sm:$0xff] %v218_v43 }
  0x15   :  { %221 = vst [vmem:[%s332_s1 + $0x10] sm:$0xff] %v220_v44  ;;  %v222_v45 = vld [vmem:[#allocation1 + $0x18] sm:$0xff]  ;;  %v224_v46 = vld [vmem:[#allocation1 + $0x20] sm:$0xff] }
  0x16   :  { %223 = vst [vmem:[%s332_s1 + $0x18] sm:$0xff] %v222_v45  ;;  %v226_v47 = vld [vmem:[#allocation1 + $0x28] sm:$0xff]  ;;  %225 = vst [vmem:[%s332_s1 + $0x20] sm:$0xff] %v224_v46 }
  0x17   :  { %227 = vst [vmem:[%s332_s1 + $0x28] sm:$0xff] %v226_v47  ;;  %v228_v48 = vld [vmem:[#allocation1 + $0x30] sm:$0xff]  ;;  %v230_v49 = vld [vmem:[#allocation1 + $0x38] sm:$0xff] }
  0x18   :  { %229 = vst [vmem:[%s332_s1 + $0x30] sm:$0xff] %v228_v48  ;;  %231 = vst [vmem:[%s332_s1 + $0x38] sm:$0xff] %v230_v49 }

</bundles_post_ra>
